<compile_context>
chip_gen: v5e
topology: v5e:2x2
jax: 0.10.0
libtpu: 0.0.40
codegen_flags: <defaults>
</compile_context>

<pallas_src>
import jax
import jax.numpy as jnp
from jax.experimental import pallas as pl
from jax.experimental.pallas import tpu as pltpu

HIDDEN = 256


def _round_up(x, m):
    return ((x + m - 1) // m) * m


def _cdiv(a, b):
    return (a + b - 1) // b


def _soft_q_kernel(xa_ref, w1_ref, b1_ref, w2_ref, b2_ref, w3_ref, b3_ref, out_ref):
    # Layer 1: single matmul over the pre-concatenated [x, a] tile.
    h1 = jnp.dot(xa_ref[...], w1_ref[...], preferred_element_type=jnp.float32) + b1_ref[...]
    h1 = jnp.maximum(h1, 0.0).astype(w2_ref.dtype)
    # Layer 2
    h2 = jnp.dot(h1, w2_ref[...], preferred_element_type=jnp.float32) + b2_ref[...]
    h2 = jnp.maximum(h2, 0.0).astype(w3_ref.dtype)
    # Layer 3 (256 -> 1); output stays lane-narrow (no HBM padding) and f32.
    out_ref[...] = (jnp.dot(h2, w3_ref[...], preferred_element_type=jnp.float32)
                    + b3_ref[...]).astype(out_ref.dtype)


def soft_q_forward(x, a, params, *, block_batch=1024, use_bf16=False):
    """x: (B, obs_dim), a: (B, act_dim) -> (B, 1) float32 q-values."""
    w1, b1, w2, b2, w3, b3 = params
    compute_dtype = jnp.bfloat16 if use_bf16 else jnp.float32

    # Fold concat([x, a]) into one input so layer 1 is a single MXU pass.
    xa = jnp.concatenate([x.astype(jnp.float32), a.astype(jnp.float32)], axis=1)
    xa = xa.astype(compute_dtype)
    w1c = w1.astype(compute_dtype)
    b1c = b1.astype(compute_dtype)
    w2c = w2.astype(compute_dtype)
    b2c = b2.astype(compute_dtype)
    w3c = w3.astype(compute_dtype)
    b3c = b3.astype(compute_dtype)

    B, in_dim = xa.shape

    # --- batch tiling -------------------------------------------------------
    # tm must be a multiple of 8 (BlockSpec (8,128) rule on the second-minor dim).
    block_batch = max(8, _round_up(block_batch, 8))
    bp8 = _round_up(B, 8)
    steps = _cdiv(bp8, block_batch)
    if bp8 >= 256:
        # >= 2 grid steps so the "parallel" batch axis can shard across v7x's 2 TCs;
        # on single-TC v5e/v6e the extra step only adds ~0.35 us of overhead.
        steps = max(steps, 2)
    tm = min(block_batch, _round_up(_cdiv(bp8, steps), 8))
    bp = _round_up(B, tm)
    if bp != B:
        xa = jnp.pad(xa, ((0, bp - B), (0, 0)))
    grid = (bp // tm,)

    itm = jnp.dtype(compute_dtype).itemsize
    flops = 2 * bp * (in_dim * HIDDEN + HIDDEN * HIDDEN + HIDDEN * 1)
    bytes_accessed = int(
        itm * (bp * in_dim                       # activations in
               + in_dim * HIDDEN + HIDDEN * HIDDEN + HIDDEN * 1   # weights
               + HIDDEN + HIDDEN + 1)            # biases
        + 4 * bp * 1)                            # f32 q-values out

    out = pl.pallas_call(
        _soft_q_kernel,
        out_shape=jax.ShapeDtypeStruct((bp, 1), jnp.float32),
        grid=grid,
        in_specs=[
            pl.BlockSpec((tm, in_dim), lambda i: (i, 0)),       # [x, a] tile (pipelined)
            pl.BlockSpec((in_dim, HIDDEN), lambda i: (0, 0)),   # w1 (VMEM-resident)
            pl.BlockSpec((1, HIDDEN), lambda i: (0, 0)),        # b1 (resident)
            pl.BlockSpec((HIDDEN, HIDDEN), lambda i: (0, 0)),   # w2 (resident)
            pl.BlockSpec((1, HIDDEN), lambda i: (0, 0)),        # b2 (resident)
            pl.BlockSpec((HIDDEN, 1), lambda i: (0, 0)),        # w3 (resident)
            pl.BlockSpec((1, 1), lambda i: (0, 0)),             # b3 (resident)
        ],
        out_specs=pl.BlockSpec((tm, 1), lambda i: (i, 0)),
        compiler_params=pltpu.CompilerParams(
            dimension_semantics=("parallel",)),
        cost_estimate=pl.CostEstimate(
            flops=flops, transcendentals=0, bytes_accessed=bytes_accessed),
    )(xa, w1c, b1c, w2c, b2c, w3c, b3c)

    if bp != B:
        out = out[:B]
    return out


def _orthogonal(key, out_dim, in_dim, gain):
    """Deterministic orthogonal init, mimicking torch.nn.init.orthogonal_ on a
    weight of shape (out_dim, in_dim)."""
    rows, cols = out_dim, in_dim
    flat = jax.random.normal(key, (max(rows, cols), min(rows, cols)), dtype=jnp.float32)
    q, r = jnp.linalg.qr(flat)
    q = q * jnp.sign(jnp.diagonal(r))  # make the decomposition unique
    if rows < cols:
        q = q.T
    return gain * q[:rows, :cols]


def init_params(key, obs_dim, act_dim):
    in_dim = obs_dim + act_dim
    k1, k2, k3 = jax.random.split(key, 3)
    sqrt2 = float(jnp.sqrt(2.0))
    # torch Linear stores weight as (out, in); we transpose to (in, out) for x @ W.
    w1 = _orthogonal(k1, HIDDEN, in_dim, sqrt2).T          # (in_dim, 256)
    b1 = jnp.zeros((1, HIDDEN), jnp.float32)
    w2 = _orthogonal(k2, HIDDEN, HIDDEN, sqrt2).T          # (256, 256)
    b2 = jnp.zeros((1, HIDDEN), jnp.float32)
    w3 = _orthogonal(k3, 1, HIDDEN, 1.0).T                 # (256, 1)
    b3 = jnp.zeros((1, 1), jnp.float32)
    return (w1, b1, w2, b2, w3, b3)


def reference_forward(x, a, params):
    w1, b1, w2, b2, w3, b3 = params
    xa = jnp.concatenate([x.astype(jnp.float32), a.astype(jnp.float32)], axis=1)
    h1 = jnp.maximum(xa @ w1 + b1, 0.0)
    h2 = jnp.maximum(h1 @ w2 + b2, 0.0)
    return h2 @ w3 + b3


if __name__ == "__main__":
    B, OBS_DIM, ACT_DIM = 24, 16, 4
    key = jax.random.PRNGKey(0)
    kx, ka, kp = jax.random.split(key, 3)
    x = jax.random.normal(kx, (B, OBS_DIM), dtype=jnp.float32)
    a = jax.random.normal(ka, (B, ACT_DIM), dtype=jnp.float32)
    params = init_params(kp, OBS_DIM, ACT_DIM)

    q_ref = reference_forward(x, a, params)

    # block_batch=8 forces a multi-step batch grid even at this small test size,
    # exercising the pipelined tiling path (production default is 1024).
    q = soft_q_forward(x, a, params, block_batch=8)
    q = jax.block_until_ready(q)
    assert q.shape == (B, 1)
    assert jnp.allclose(q, q_ref, atol=1e-4, rtol=1e-4), float(jnp.max(jnp.abs(q - q_ref)))

    # Exercise the fast bf16 path (f32 accumulation); loose tolerance by design.
    q_bf16 = jax.block_until_ready(soft_q_forward(x, a, params, block_batch=8, use_bf16=True))
    assert q_bf16.shape == (B, 1)
    assert jnp.all(jnp.isfinite(q_bf16))
    assert float(jnp.max(jnp.abs(q_bf16 - q_ref))) < 1e-1

    print("KERNEL_OK")
</pallas_src>

<mosaic_0001>
module attributes {stable_mosaic.version = 11 : i64} {
  func.func @_soft_q_kernel(%arg0: i32, %arg1: memref<8x20xf32, #tpu.memory_space<vmem>>, %arg2: memref<20x256xf32, #tpu.memory_space<vmem>>, %arg3: memref<1x256xf32, #tpu.memory_space<vmem>>, %arg4: memref<256x256xf32, #tpu.memory_space<vmem>>, %arg5: memref<1x256xf32, #tpu.memory_space<vmem>>, %arg6: memref<256x1xf32, #tpu.memory_space<vmem>>, %arg7: memref<1x1xf32, #tpu.memory_space<vmem>>, %arg8: memref<8x1xf32, #tpu.memory_space<vmem>>) attributes {dimension_semantics = [#tpu.dimension_semantics<parallel>], iteration_bounds = array<i64: 3>, scalar_prefetch = 0 : i64, scratch_operands = 0 : i64, tpu.core_type = #tpu.core_type<tc>, window_params = [{transform_indices = @transform_0, window_bounds = array<i64: 8, 20>}, {pipeline_mode = #tpu.pipeline_mode<synchronous>, transform_indices = @transform_1, window_bounds = array<i64: 20, 256>}, {pipeline_mode = #tpu.pipeline_mode<synchronous>, transform_indices = @transform_2, window_bounds = array<i64: 1, 256>}, {pipeline_mode = #tpu.pipeline_mode<synchronous>, transform_indices = @transform_3, window_bounds = array<i64: 256, 256>}, {pipeline_mode = #tpu.pipeline_mode<synchronous>, transform_indices = @transform_4, window_bounds = array<i64: 1, 256>}, {pipeline_mode = #tpu.pipeline_mode<synchronous>, transform_indices = @transform_5, window_bounds = array<i64: 256, 1>}, {pipeline_mode = #tpu.pipeline_mode<synchronous>, transform_indices = @transform_6, window_bounds = array<i64: 1, 1>}, {transform_indices = @transform_7, window_bounds = array<i64: 8, 1>}]} {
    %c0 = arith.constant 0 : index
    %c0_0 = arith.constant 0 : index
    %0 = vector.load %arg1[%c0, %c0_0] : memref<8x20xf32, #tpu.memory_space<vmem>>, vector<8x20xf32>
    %c0_1 = arith.constant 0 : index
    %c0_2 = arith.constant 0 : index
    %1 = vector.load %arg2[%c0_1, %c0_2] : memref<20x256xf32, #tpu.memory_space<vmem>>, vector<20x256xf32>
    %cst = arith.constant dense<0.000000e+00> : vector<8x256xf32>
    %2 = tpu.matmul %0, %1, %cst {dimension_numbers = #tpu.dot_dimension_numbers<[1], [0], [0], [1], [0, 0, 1, 1], [], []>} : vector<8x20xf32>, vector<20x256xf32>, vector<8x256xf32> -> vector<8x256xf32>
    %c0_3 = arith.constant 0 : index
    %c0_4 = arith.constant 0 : index
    %3 = vector.load %arg3[%c0_3, %c0_4] : memref<1x256xf32, #tpu.memory_space<vmem>>, vector<1x256xf32>
    %4 = vector.broadcast %3 : vector<1x256xf32> to vector<8x256xf32>
    %5 = arith.addf %2, %4 : vector<8x256xf32>
    %cst_5 = arith.constant 0.000000e+00 : f32
    %6 = vector.broadcast %cst_5 : f32 to vector<8x256xf32>
    %7 = arith.maximumf %5, %6 : vector<8x256xf32>
    %c0_6 = arith.constant 0 : index
    %c0_7 = arith.constant 0 : index
    %8 = vector.load %arg4[%c0_6, %c0_7] : memref<256x256xf32, #tpu.memory_space<vmem>>, vector<256x256xf32>
    %cst_8 = arith.constant dense<0.000000e+00> : vector<8x256xf32>
    %9 = tpu.matmul %7, %8, %cst_8 {dimension_numbers = #tpu.dot_dimension_numbers<[1], [0], [0], [1], [0, 0, 1, 1], [], []>} : vector<8x256xf32>, vector<256x256xf32>, vector<8x256xf32> -> vector<8x256xf32>
    %c0_9 = arith.constant 0 : index
    %c0_10 = arith.constant 0 : index
    %10 = vector.load %arg5[%c0_9, %c0_10] : memref<1x256xf32, #tpu.memory_space<vmem>>, vector<1x256xf32>
    %11 = vector.broadcast %10 : vector<1x256xf32> to vector<8x256xf32>
    %12 = arith.addf %9, %11 : vector<8x256xf32>
    %cst_11 = arith.constant 0.000000e+00 : f32
    %13 = vector.broadcast %cst_11 : f32 to vector<8x256xf32>
    %14 = arith.maximumf %12, %13 : vector<8x256xf32>
    %c0_12 = arith.constant 0 : index
    %c0_13 = arith.constant 0 : index
    %15 = vector.load %arg6[%c0_12, %c0_13] : memref<256x1xf32, #tpu.memory_space<vmem>>, vector<256x1xf32>
    %cst_14 = arith.constant dense<0.000000e+00> : vector<8x1xf32>
    %16 = tpu.matmul %14, %15, %cst_14 {dimension_numbers = #tpu.dot_dimension_numbers<[1], [0], [0], [1], [0, 0, 1, 1], [], []>} : vector<8x256xf32>, vector<256x1xf32>, vector<8x1xf32> -> vector<8x1xf32>
    %c0_15 = arith.constant 0 : index
    %c0_16 = arith.constant 0 : index
    %17 = vector.load %arg7[%c0_15, %c0_16] : memref<1x1xf32, #tpu.memory_space<vmem>>, vector<1x1xf32>
    %18 = vector.broadcast %17 : vector<1x1xf32> to vector<8x1xf32>
    %19 = arith.addf %16, %18 : vector<8x1xf32>
    %c0_17 = arith.constant 0 : index
    %c0_18 = arith.constant 0 : index
    %20 = vector.load %arg8[%c0_17, %c0_18] : memref<8x1xf32, #tpu.memory_space<vmem>>, vector<8x1xf32>
    tpu.vector_store %arg8[%c0_17, %c0_18], %19 {strides = array<i32>} : memref<8x1xf32, #tpu.memory_space<vmem>>, vector<8x1xf32>,
    return
  }
  func.func @transform_0(%arg0: i32) -> (i32, i32) {
    %c0_i32 = arith.constant 0 : i32
    %c0_i32_0 = arith.constant 0 : i32
    return %arg0, %c0_i32 : i32, i32
  }
  func.func @transform_1(%arg0: i32) -> (i32, i32) {
    %c0_i32 = arith.constant 0 : i32
    %c0_i32_0 = arith.constant 0 : i32
    %c0_i32_1 = arith.constant 0 : i32
    return %c0_i32, %c0_i32_0 : i32, i32
  }
  func.func @transform_2(%arg0: i32) -> (i32, i32) {
    %c0_i32 = arith.constant 0 : i32
    %c0_i32_0 = arith.constant 0 : i32
    %c0_i32_1 = arith.constant 0 : i32
    return %c0_i32, %c0_i32_0 : i32, i32
  }
  func.func @transform_3(%arg0: i32) -> (i32, i32) {
    %c0_i32 = arith.constant 0 : i32
    %c0_i32_0 = arith.constant 0 : i32
    %c0_i32_1 = arith.constant 0 : i32
    return %c0_i32, %c0_i32_0 : i32, i32
  }
  func.func @transform_4(%arg0: i32) -> (i32, i32) {
    %c0_i32 = arith.constant 0 : i32
    %c0_i32_0 = arith.constant 0 : i32
    %c0_i32_1 = arith.constant 0 : i32
    return %c0_i32, %c0_i32_0 : i32, i32
  }
  func.func @transform_5(%arg0: i32) -> (i32, i32) {
    %c0_i32 = arith.constant 0 : i32
    %c0_i32_0 = arith.constant 0 : i32
    %c0_i32_1 = arith.constant 0 : i32
    return %c0_i32, %c0_i32_0 : i32, i32
  }
  func.func @transform_6(%arg0: i32) -> (i32, i32) {
    %c0_i32 = arith.constant 0 : i32
    %c0_i32_0 = arith.constant 0 : i32
    %c0_i32_1 = arith.constant 0 : i32
    return %c0_i32, %c0_i32_0 : i32, i32
  }
  func.func @transform_7(%arg0: i32) -> (i32, i32) {
    %c0_i32 = arith.constant 0 : i32
    %c0_i32_0 = arith.constant 0 : i32
    return %arg0, %c0_i32 : i32, i32
  }
}

</mosaic_0001>

<bundles_post_ra>
// kernel: tpu_custom_call.1
= control target key start
LH: loop header
LB: loop body
LE: loop exit
PB: predicated region body
PF: predicated region fallthrough
CT: control target
= control target key end

     0   :  { %s926_s0 = inlined_call_operand.vmem [shape: f32[24,20], index: 0, kind: input, shape index: {}]   ;;  %s927_s1 = inlined_call_operand.vmem [shape: f32[20,256], index: 1, kind: input, shape index: {}]   ;;  %s928_s2 = inlined_call_operand.vmem [shape: f32[1,256], index: 2, kind: input, shape index: {}]   ;;  %s929_s3 = inlined_call_operand.hbm [shape: f32[256,256], index: 3, kind: input, shape index: {}]   ;;  %s930_s4 = inlined_call_operand.vmem [shape: f32[1,256], index: 4, kind: input, shape index: {}]   ;;  %s931_s5 = inlined_call_operand.vmem [shape: f32[256,1], index: 5, kind: input, shape index: {}]   ;;  %s932_s6 = inlined_call_operand.<no memory space> [shape: f32[1,1], index: 6, kind: input, shape index: {}]   ;;  %s933_s7 = inlined_call_operand.vmem [shape: f32[24,1], index: 7, kind: output, shape index: {}]  }
   0x1   :  { %v12_v0 = vstv %s932_s6 }
   0x2   :  { %13 = vst [vmem:[#allocation2] sm:$0x1] %v12_v0 }
   0x3   :  { %14 = vsyncpa [#allocation4], 0  ;;  %s779_s26 = smov 0  }
   0x4 LB: > { %s220_s29 = sshll.u32 %s929_s3, 4  ;;  %s654_s30 = sadd.s32 4294967295, %s731_s26   ;;  %s731_s26 = sphi %s779_s26, %s20_s26   ;;  %s221_s29 = int_to_ptr.hbm [resolvable:$true] %s220_s29 }
   0x5   : > { %p656_p0 = scmp.ge.s32.totalorder %s731_s26, 1  ;;  %p203_p1 = scmp.lt.s32.totalorder %s731_s26, 4 }
   0x6   : > { %p677_p2 = scmp.eq.s32.totalorder %s654_s30, 0  ;;  %s733_s6 = smov [#allocation3]  }
   0x7   : > { %p204_p3 = pnand %p656_p0, %p203_p1  ;;  %s222_s8 = sshll.u32 %s733_s6, 4  ;;  %s223_s8 = int_to_ptr.vmem [resolvable:$true] %s222_s8 }
   0x8   : > { %s734_s9 = smov 256   ;;  %s735_s10 = smov 16  }
   0x9   : > { %p673_p4 = pneg %p204_p3  ;;  %254 = sbr.rel (%p204_p3) target bundleno = 426 (0x1aa), region = 48 }
   0xb   : > { %p674_p5 = pnand %p677_p2, %p673_p4 }
   0xd   : > { %676 = dma.hbm_to_vmem [thread:$0]  (!%p674_p5), %s221_s29, 8192, %s223_s8, [#allocation4], %s734_s9, %s734_s9, %s735_s10  }
   0xe   : > { %726 = dma.done.wait (%p677_p2), [#allocation4], 8192  }
   0xf   : > { %728 = vsyncadd (%p677_p2), [#allocation4], 4294959104  ;;  %p285_p6 = scmp.lt.s32.totalorder %s654_s30, 2  ;;  %vm310_vm0 = vcmask 1043456   ;;  %v298_v1 = vld [vmem:[%s927_s1 + $0x20] sm:$0xf] }
  0x10   : > { %v296_v2 = vld [vmem:[%s927_s1 + $0x10] sm:$0xff]  ;;  %v299_v3 = vld [vmem:[%s927_s1 + $0x28] sm:$0xf]  ;;  %663 = vmatpush.msk.msra.mxu0 %vm310_vm0, %v298_v1  ;;  %v297_v4 = vld [vmem:[%s927_s1 + $0x18] sm:$0xff]  ;;  %vm306_vm1 = vcmask 162816   ;;  %vm587_vm2 = vcmask 7168  }
  0x11   : > { %s935_s30 = smov (!%p285_p6, %s654_s30), 2  ;;  %665 = vmatpush.msk.msra.mxu1 %vm310_vm0, %v299_v3  ;;  %v294_v5 = vld [vmem:[%s927_s1] sm:$0xff]  ;;  %v295_v6 = vld [vmem:[%s927_s1 + $0x8] sm:$0xff]  ;;  %v389_v7 = vld [vmem:[#allocation3 + $0xf0] sm:$0xff] }
  0x12   : > { %s661_s11 = sshll.u32 %s935_s30, 3  ;;  %331 = vmatpush.msra.mxu0 %v296_v2  ;;  %v421_v9 = vld [vmem:[#allocation3 + $0x1f0] sm:$0xff]  ;;  %429 = vmatpush.msra.mxu2 %v389_v7  ;;  %v390_v10 = vld [vmem:[#allocation3 + $0xf8] sm:$0xff]  ;;  %v387_v11 = vld [vmem:[#allocation3 + $0xe0] sm:$0xff] }
  0x13   : > { %s288_s20 = scalar_lea.vmem %s926_s0, %s661_s11  ;;  %351 = vmatpush.msra.mxu1 %v297_v4  ;;  %449 = vmatpush.msra.mxu3 %v421_v9  ;;  %v422_v12 = vld [vmem:[#allocation3 + $0x1f8] sm:$0xff]  ;;  %v419_v13 = vld [vmem:[#allocation3 + $0x1e0] sm:$0xff]  ;;  %v388_v14 = vld [vmem:[#allocation3 + $0xe8] sm:$0xff]  ;;  %s292_s13 = scalar_lea.vmem %s933_s7, %s661_s11 }
  0x14   : > { %v293_v8 = vld [vmem:[%s288_s20] sm:$0xff]  ;;  %332 = vmatpush.msra.mxu0 %v294_v5  ;;  %v385_v15 = vld [vmem:[#allocation3 + $0xd0] sm:$0xff]  ;;  %430 = vmatpush.msra.mxu2 %v387_v11  ;;  %v420_v16 = vld [vmem:[#allocation3 + $0x1e8] sm:$0xff] }
  0x15   : > { %352 = vmatpush.msra.mxu1 %v295_v6  ;;  %664 = vmatmul.msk.f32.vlgmr.msra.gmra.mxu0 %vm306_vm1, %v293_v8  ;;  %v417_v17 = vld [vmem:[#allocation3 + $0x1d0] sm:$0xff]  ;;  %v386_v18 = vld [vmem:[#allocation3 + $0xd8] sm:$0xff]  ;;  %v383_v19 = vld [vmem:[#allocation3 + $0xc0] sm:$0xff] }
  0x16   : > { %666 = vmatmul.msk.f32.vlgmr.msra.gmra.mxu1 %vm306_vm1, %v293_v8  ;;  %469 = vmatpush.msrb.mxu0 %v390_v10  ;;  %v418_v20 = vld [vmem:[#allocation3 + $0x1d8] sm:$0xff]  ;;  %v415_v21 = vld [vmem:[#allocation3 + $0x1c0] sm:$0xff]  ;;  %v384_v22 = vld [vmem:[#allocation3 + $0xc8] sm:$0xff] }
  0x17   : > { %489 = vmatpush.msrb.mxu1 %v422_v12  ;;  %450 = vmatpush.msra.mxu3 %v419_v13  ;;  %v381_v23 = vld [vmem:[#allocation3 + $0xb0] sm:$0xff]  ;;  %v416_v24 = vld [vmem:[#allocation3 + $0x1c8] sm:$0xff]  ;;  %v382_v26 = vld [vmem:[#allocation3 + $0xb8] sm:$0xff] }
  0x18   : > { %470 = vmatpush.msrb.mxu0 %v388_v14  ;;  %431 = vmatpush.msra.mxu2 %v385_v15  ;;  %v413_v25 = vld [vmem:[#allocation3 + $0x1b0] sm:$0xff]  ;;  %v379_v27 = vld [vmem:[#allocation3 + $0xa0] sm:$0xff]  ;;  %v414_v28 = vld [vmem:[#allocation3 + $0x1b8] sm:$0xff] }
  0x19   : > { %490 = vmatpush.msrb.mxu1 %v420_v16  ;;  %451 = vmatpush.msra.mxu3 %v417_v17  ;;  %v411_v29 = vld [vmem:[#allocation3 + $0x1a0] sm:$0xff]  ;;  %v380_v30 = vld [vmem:[#allocation3 + $0xa8] sm:$0xff]  ;;  %v377_v31 = vld [vmem:[#allocation3 + $0x90] sm:$0xff] }
  0x1a   : > { %471 = vmatpush.msrb.mxu0 %v386_v18  ;;  %432 = vmatpush.msra.mxu2 %v383_v19  ;;  %v412_v32 = vld [vmem:[#allocation3 + $0x1a8] sm:$0xff]  ;;  %v409_v33 = vld [vmem:[#allocation3 + $0x190] sm:$0xff]  ;;  %v378_v34 = vld [vmem:[#allocation3 + $0x98] sm:$0xff] }
  0x1b   : > { %491 = vmatpush.msrb.mxu1 %v418_v20  ;;  %452 = vmatpush.msra.mxu3 %v415_v21  ;;  %v375_v35 = vld [vmem:[#allocation3 + $0x80] sm:$0xff]  ;;  %v410_v36 = vld [vmem:[#allocation3 + $0x198] sm:$0xff]  ;;  %v376_v38 = vld [vmem:[#allocation3 + $0x88] sm:$0xff] }
  0x1c   : > { %472 = vmatpush.msrb.mxu0 %v384_v22  ;;  %433 = vmatpush.msra.mxu2 %v381_v23  ;;  %v407_v37 = vld [vmem:[#allocation3 + $0x180] sm:$0xff]  ;;  %v373_v39 = vld [vmem:[#allocation3 + $0x70] sm:$0xff]  ;;  %v408_v40 = vld [vmem:[#allocation3 + $0x188] sm:$0xff] }
  0x1d   : > { %492 = vmatpush.msrb.mxu1 %v416_v24  ;;  %453 = vmatpush.msra.mxu3 %v413_v25  ;;  %v405_v41 = vld [vmem:[#allocation3 + $0x170] sm:$0xff]  ;;  %v374_v42 = vld [vmem:[#allocation3 + $0x78] sm:$0xff]  ;;  %v371_v43 = vld [vmem:[#allocation3 + $0x60] sm:$0xff] }
  0x1e   : > { %473 = vmatpush.msrb.mxu0 %v382_v26  ;;  %434 = vmatpush.msra.mxu2 %v379_v27  ;;  %v406_v44 = vld [vmem:[#allocation3 + $0x178] sm:$0xff]  ;;  %v403_v45 = vld [vmem:[#allocation3 + $0x160] sm:$0xff]  ;;  %v372_v46 = vld [vmem:[#allocation3 + $0x68] sm:$0xff] }
  0x1f   : > { %493 = vmatpush.msrb.mxu1 %v414_v28  ;;  %454 = vmatpush.msra.mxu3 %v411_v29  ;;  %v369_v47 = vld [vmem:[#allocation3 + $0x50] sm:$0xff]  ;;  %v404_v48 = vld [vmem:[#allocation3 + $0x168] sm:$0xff]  ;;  %v370_v50 = vld [vmem:[#allocation3 + $0x58] sm:$0xff] }
  0x20   : > { %474 = vmatpush.msrb.mxu0 %v380_v30  ;;  %435 = vmatpush.msra.mxu2 %v377_v31  ;;  %v401_v49 = vld [vmem:[#allocation3 + $0x150] sm:$0xff]  ;;  %v367_v51 = vld [vmem:[#allocation3 + $0x40] sm:$0xff]  ;;  %v402_v52 = vld [vmem:[#allocation3 + $0x158] sm:$0xff] }
  0x21   : > { %494 = vmatpush.msrb.mxu1 %v412_v32  ;;  %455 = vmatpush.msra.mxu3 %v409_v33  ;;  %v399_v53 = vld [vmem:[#allocation3 + $0x140] sm:$0xff]  ;;  %v368_v54 = vld [vmem:[#allocation3 + $0x48] sm:$0xff]  ;;  %v365_v55 = vld [vmem:[#allocation3 + $0x30] sm:$0xff] }
  0x22   : > { %475 = vmatpush.msrb.mxu0 %v378_v34  ;;  %436 = vmatpush.msra.mxu2 %v375_v35  ;;  %v400_v56 = vld [vmem:[#allocation3 + $0x148] sm:$0xff]  ;;  %v366_v57 = vld [vmem:[#allocation3 + $0x38] sm:$0xff]  ;;  %v363_v58 = vld [vmem:[#allocation3 + $0x20] sm:$0xff] }
  0x23   : > { %495 = vmatpush.msrb.mxu1 %v410_v36  ;;  %456 = vmatpush.msra.mxu3 %v407_v37  ;;  %v397_v59 = vld [vmem:[#allocation3 + $0x130] sm:$0xff]  ;;  %v364_v60 = vld [vmem:[#allocation3 + $0x28] sm:$0xff]  ;;  %v398_v61 = vld [vmem:[#allocation3 + $0x138] sm:$0xff] }
  0x24   : > { %476 = vmatpush.msrb.mxu0 %v376_v38  ;;  %437 = vmatpush.msra.mxu2 %v373_v39  ;;  %v361_v62 = vld [vmem:[#allocation3 + $0x10] sm:$0xff]  ;;  %v395_v63 = vld [vmem:[#allocation3 + $0x120] sm:$0xff]  ;;  %v362_v0 = vld [vmem:[#allocation3 + $0x18] sm:$0xff] }
  0x25   : > { %496 = vmatpush.msrb.mxu1 %v408_v40  ;;  %457 = vmatpush.msra.mxu3 %v405_v41  ;;  %v396_v1 = vld [vmem:[#allocation3 + $0x128] sm:$0xff]  ;;  %v359_v2 = vld [vmem:[#allocation3] sm:$0xff]  ;;  %v393_v3 = vld [vmem:[#allocation3 + $0x110] sm:$0xff] }
  0x26   : > { %477 = vmatpush.msrb.mxu0 %v374_v42  ;;  %438 = vmatpush.msra.mxu2 %v371_v43  ;;  %v360_v4 = vld [vmem:[#allocation3 + $0x8] sm:$0xff]  ;;  %v394_v5 = vld [vmem:[#allocation3 + $0x118] sm:$0xff]  ;;  %v391_v6 = vld [vmem:[#allocation3 + $0x100] sm:$0xff] }
  0x27   : > { %497 = vmatpush.msrb.mxu1 %v406_v44  ;;  %458 = vmatpush.msra.mxu3 %v403_v45  ;;  %v392_v7 = vld [vmem:[#allocation3 + $0x108] sm:$0xff]  ;;  %v542_v8 = vld [vmem:[%s931_s5 + $0xf8] sm:$0xff]  ;;  %v539_v14 = vld [vmem:[%s931_s5 + $0xe0] sm:$0xff] }
  0x28   : > { %478 = vmatpush.msrb.mxu0 %v372_v46  ;;  %439 = vmatpush.msra.mxu2 %v369_v47  ;;  %v541_v9 = vld [vmem:[%s931_s5 + $0xf0] sm:$0xff]  ;;  %v526_v10 = vld [vmem:[%s931_s5 + $0x78] sm:$0xff]  ;;  %v540_v12 = vld [vmem:[%s931_s5 + $0xe8] sm:$0xff] }
  0x29   : > { %498 = vmatpush.msrb.mxu1 %v404_v48  ;;  %459 = vmatpush.msra.mxu3 %v401_v49  ;;  %v525_v11 = vld [vmem:[%s931_s5 + $0x70] sm:$0xff]  ;;  %v524_v13 = vld [vmem:[%s931_s5 + $0x68] sm:$0xff]  ;;  %v523_v15 = vld [vmem:[%s931_s5 + $0x60] sm:$0xff] }
  0x2a   : > { %479 = vmatpush.msrb.mxu0 %v370_v50  ;;  %440 = vmatpush.msra.mxu2 %v367_v51  ;;  %v538_v16 = vld [vmem:[%s931_s5 + $0xd8] sm:$0xff]  ;;  %v537_v18 = vld [vmem:[%s931_s5 + $0xd0] sm:$0xff]  ;;  %v536_v20 = vld [vmem:[%s931_s5 + $0xc8] sm:$0xff] }
  0x2b   : > { %499 = vmatpush.msrb.mxu1 %v402_v52  ;;  %460 = vmatpush.msra.mxu3 %v399_v53  ;;  %v522_v17 = vld [vmem:[%s931_s5 + $0x58] sm:$0xff]  ;;  %v521_v19 = vld [vmem:[%s931_s5 + $0x50] sm:$0xff]  ;;  %v520_v21 = vld [vmem:[%s931_s5 + $0x48] sm:$0xff] }
  0x2c   : > { %480 = vmatpush.msrb.mxu0 %v368_v54  ;;  %441 = vmatpush.msra.mxu2 %v365_v55  ;;  %v535_v22 = vld [vmem:[%s931_s5 + $0xc0] sm:$0xff]  ;;  %v534_v24 = vld [vmem:[%s931_s5 + $0xb8] sm:$0xff]  ;;  %v533_v26 = vld [vmem:[%s931_s5 + $0xb0] sm:$0xff] }
  0x2d   : > { %500 = vmatpush.msrb.mxu1 %v400_v56  ;;  %461 = vmatpush.msra.mxu3 %v397_v59  ;;  %v519_v23 = vld [vmem:[%s931_s5 + $0x40] sm:$0xff]  ;;  %v518_v25 = vld [vmem:[%s931_s5 + $0x38] sm:$0xff]  ;;  %v532_v27 = vld [vmem:[%s931_s5 + $0xa8] sm:$0xff] }
  0x2e   : > { %481 = vmatpush.msrb.mxu0 %v366_v57  ;;  %442 = vmatpush.msra.mxu2 %v363_v58  ;;  %v300_v28 = vld [vmem:[%s928_s2] sm:$0x3]  ;;  %v517_v38 = vld [vmem:[%s931_s5 + $0x30] sm:$0xff]  ;;  %v530_v39 = vld [vmem:[%s931_s5 + $0x98] sm:$0xff] }
  0x2f   : > { %501 = vmatpush.msrb.mxu1 %v398_v61  ;;  %462 = vmatpush.msra.mxu3 %v395_v63  ;;  %v531_v29 = vld [vmem:[%s931_s5 + $0xa0] sm:$0xff]  ;;  %v302_v30 = vperm.slane %v300_v28, 0  ;;  %v303_v31 = vperm.slane %v300_v28, 1  ;;  %v516_v40 = vld [vmem:[%s931_s5 + $0x28] sm:$0xff]  ;;  %v529_v41 = vld [vmem:[%s931_s5 + $0x90] sm:$0xff] }
  0x30   : > { %482 = vmatpush.msrb.mxu0 %v364_v60  ;;  %443 = vmatpush.msra.mxu2 %v361_v62  ;;  %v515_v42 = vld [vmem:[%s931_s5 + $0x20] sm:$0xff]  ;;  %v528_v43 = vld [vmem:[%s931_s5 + $0x88] sm:$0xff]  ;;  %v514_v44 = vld [vmem:[%s931_s5 + $0x18] sm:$0xff] }
  0x31   : > { %502 = vmatpush.msrb.mxu1 %v396_v1  ;;  %463 = vmatpush.msra.mxu3 %v393_v3  ;;  %v527_v45 = vld [vmem:[%s931_s5 + $0x80] sm:$0xff]  ;;  %v513_v46 = vld [vmem:[%s931_s5 + $0x10] sm:$0xff]  ;;  %v512_v47 = vld [vmem:[%s931_s5 + $0x8] sm:$0xff] }
  0x32   : > { %483 = vmatpush.msrb.mxu0 %v362_v0  ;;  %444 = vmatpush.msra.mxu2 %v359_v2  ;;  %v511_v48 = vld [vmem:[%s931_s5] sm:$0xff] }
  0x33   : > { %503 = vmatpush.msrb.mxu1 %v394_v5  ;;  %464 = vmatpush.msra.mxu3 %v391_v6  ;;  %v423_v49 = vld [vmem:[%s930_s4] sm:$0x3] }
  0x34   : > { %484 = vmatpush.msrb.mxu0 %v360_v4  ;;  %547 = vmatpush.msrb.mxu2 %v526_v10  ;;  %v426_v50 = vperm.slane %v423_v49, 1  ;;  %v425_v55 = vperm.slane %v423_v49, 0  ;;  %v690_v62 = vld [vmem:[#allocation2] ss:$0 sm:$0xff] }
  0x35   : > { %504 = vmatpush.msrb.mxu1 %v392_v7  ;;  %567 = vmatpush.msrb.mxu3 %v542_v8 }
  0x36   : > { %548 = vmatpush.msrb.mxu2 %v525_v11 }
  0x37   : > { %568 = vmatpush.msrb.mxu3 %v541_v9 }
  0x38   : > { %549 = vmatpush.msrb.mxu2 %v524_v13 }
  0x39   : > { %569 = vmatpush.msrb.mxu3 %v540_v12 }
  0x3a   : > { %550 = vmatpush.msrb.mxu2 %v523_v15 }
  0x3b   : > { %570 = vmatpush.msrb.mxu3 %v539_v14 }
  0x3c   : > { %551 = vmatpush.msrb.mxu2 %v522_v17 }
  0x3d   : > { %571 = vmatpush.msrb.mxu3 %v538_v16 }
  0x3e   : > { %552 = vmatpush.msrb.mxu2 %v521_v19 }
  0x3f   : > { %572 = vmatpush.msrb.mxu3 %v537_v18 }
  0x40   : > { %553 = vmatpush.msrb.mxu2 %v520_v21 }
  0x41   : > { %573 = vmatpush.msrb.mxu3 %v536_v20 }
  0x42   : > { %554 = vmatpush.msrb.mxu2 %v519_v23 }
  0x43   : > { %574 = vmatpush.msrb.mxu3 %v535_v22 }
  0x44   : > { %555 = vmatpush.msrb.mxu2 %v518_v25 }
  0x45   : > { %575 = vmatpush.msrb.mxu3 %v534_v24 }
  0x46   : > { %556 = vmatpush.msrb.mxu2 %v517_v38 }
  0x47   : > { %576 = vmatpush.msrb.mxu3 %v533_v26 }
  0x48   : > { %557 = vmatpush.msrb.mxu2 %v516_v40 }
  0x49   : > { %577 = vmatpush.msrb.mxu3 %v532_v27 }
  0x4a   : > { %558 = vmatpush.msrb.mxu2 %v515_v42 }
  0x4b   : > { %578 = vmatpush.msrb.mxu3 %v531_v29 }
  0x4c   : > { %559 = vmatpush.msrb.mxu2 %v514_v44 }
  0x4d   : > { %579 = vmatpush.msrb.mxu3 %v530_v39 }
  0x4e   : > { %560 = vmatpush.msrb.mxu2 %v513_v46 }
  0x4f   : > { %580 = vmatpush.msrb.mxu3 %v529_v41 }
  0x50   : > { %561 = vmatpush.msrb.mxu2 %v512_v47 }
  0x51   : > { %581 = vmatpush.msrb.mxu3 %v528_v43 }
  0x52   : > { %562 = vmatpush.msrb.mxu2 %v511_v48 }
  0x53   : > { %582 = vmatpush.msrb.mxu3 %v527_v45 }
  0x92   : > { %v334_v32 = vpop.f32.mrf.mxu0 }
  0x93   : > { %v354_v33 = vpop.f32.mrf.mxu1  ;;  %v335_v34 = vadd.f32 %v334_v32, %v302_v30 }
  0x94   : > { %v355_v35 = vadd.f32 %v354_v33, %v303_v31 }
  0x95   : > { %v357_v36 = vmax.f32 %v335_v34, 0.0 }
  0x96   : > { %v358_v37 = vmax.f32 %v355_v35, 0.0 }
  0x97   : > { %445 = vmatmul.f32.vlgmr.msra.gmra.mxu2 %v357_v36  ;;  %485 = vmatmul.f32.vlgmr.msrb.gmra.mxu0 %v357_v36 }
  0x98   : > { %465 = vmatmul.f32.vlgmr.msra.gmra.mxu3 %v358_v37  ;;  %505 = vmatmul.f32.vlgmr.msrb.gmra.mxu1 %v358_v37 }
 0x114   : > { %v486_v51 = vpop.f32.mrf.mxu0 }
 0x115   : > { %v487_v52 = vadd.f32 %v486_v51, %v426_v50  ;;  %v506_v53 = vpop.f32.mrf.mxu1 }
 0x117   : > { %v507_v54 = vadd.f32 %v506_v53, %v487_v52 }
 0x119   : > { %v510_v56 = vmax.f32 %v507_v54, 0.0 }
 0x11a   : > { %v446_v57 = vpop.f32.mrf.mxu2 }
 0x11b   : > { %v447_v58 = vadd.f32 %v446_v57, %v425_v55  ;;  %583 = vmatmul.f32.vlgmr.msrb.gmra.mxu3 %v510_v56  ;;  %v466_v59 = vpop.f32.mrf.mxu3 }
 0x11d   : > { %v467_v60 = vadd.f32 %v466_v59, %v447_v58 }
 0x11f   : > { %v509_v61 = vmax.f32 %v467_v60, 0.0 }
 0x121   : > { %563 = vmatmul.f32.vlgmr.msrb.gmra.mxu2 %v509_v61 }
 0x19e   : > { %v584_v1 = vpop.f32.mrf.mxu3 }
 0x1a4   : > { %v564_v63 = vpop.f32.mrf.mxu2 }
 0x1a5   : > { %v565_v0 = vadd.f32 %v690_v62, %v564_v63 }
 0x1a7   : > { %v585_v2 = vadd.f32 %v584_v1, %v565_v0 }
 0x1a9   : > { %588 = vst.msk [vmem:[%s292_s13] sm:$0xff] %vm587_vm2, %v585_v2 }
 0x1aa PF: > { %s20_s26 = sadd.s32 1, %s731_s26  }
 0x1ab   : > { %p17_p7 = scmp.ge.s32.totalorder %s20_s26, 5  }
 0x1ad   :  { %19 = sbr.rel (!%p17_p7) target bundleno = 4 (0x4), region = 83 }
 0x1b2   :  { %608 = vsyncpa [#allocation4], 1 }
 0x1b3   :  { %610 = vsyncpa [#allocation4 + $0x1], 1 }

</bundles_post_ra>
